<compile_context>
chip_gen: v5e
topology: v5e:2x2
jax: 0.10.0
libtpu: 0.0.40
codegen_flags: <defaults>
</compile_context>

<pallas_src>
import math
from functools import partial

import jax
import jax.numpy as jnp
from jax import lax
from jax.experimental import pallas as pl
from jax.experimental.pallas import tpu as pltpu


# Conservative fast-path gates (see header comment): table is double-buffered
# by the BlockSpec pipeline, so 4 MiB -> <=8 MiB VMEM, safe even under v5e's
# 16 MiB default scoped VMEM; vocab cap bounds the one-hot width.
_FAST_PATH_TABLE_BYTES = 4 * 1024 * 1024
_FAST_PATH_MAX_VOCAB = 4096
# SMEM guard for the scalar-prefetched ids of the DMA-gather path
# (int32[16384] = 64 KiB, well under the ~1 MiB SMEM budget).
_MAX_TOKENS_PER_CALL = 16384


def _round_up(x: int, m: int) -> int:
    return ((x + m - 1) // m) * m


# ----------------------------------------------------------------------------
# Fast path: table resident in VMEM, one-hot gather on the MXU.
# ----------------------------------------------------------------------------
def _embedding_onehot_kernel(ids_ref, table_ref, o_ref, *, scale):
    # ids_ref:   VMEM (tm, 1) int32 token ids for this tile
    # table_ref: VMEM (V, D)  whole embedding table (resident across steps)
    # o_ref:     VMEM (tm, D) output tile
    tm = ids_ref.shape[0]
    V = table_ref.shape[0]
    ids = ids_ref[...]                                             # (tm, 1)
    one_hot = (ids == lax.broadcasted_iota(jnp.int32, (tm, V), 1))  # (tm, V)
    rows = jnp.dot(one_hot.astype(table_ref.dtype), table_ref[...],
                   preferred_element_type=jnp.float32)              # (tm, D)
    o_ref[...] = (rows * scale).astype(o_ref.dtype)


def _embed_fast(ids_pad, table, *, tm, scale):
    (n_pad,) = ids_pad.shape
    V, D = table.shape
    ids_2d = ids_pad.reshape(n_pad, 1)
    kernel = partial(_embedding_onehot_kernel, scale=scale)
    return pl.pallas_call(
        kernel,
        out_shape=jax.ShapeDtypeStruct((n_pad, D), table.dtype),
        grid_spec=pltpu.PrefetchScalarGridSpec(
            num_scalar_prefetch=0,
            grid=(n_pad // tm,),
            in_specs=[
                pl.BlockSpec((tm, 1), lambda i: (i, 0)),   # ids tile
                pl.BlockSpec((V, D), lambda i: (0, 0)),    # whole table, resident
            ],
            out_specs=pl.BlockSpec((tm, D), lambda i: (i, 0)),
        ),
        compiler_params=pltpu.CompilerParams(
            # Tiles are independent -> megacore (v7x) can split the axis.
            dimension_semantics=("parallel",),
        ),
    )(ids_2d, table)


# ----------------------------------------------------------------------------
# General path: HBM table, per-row DMA gather with double buffering.
# ----------------------------------------------------------------------------
def _embedding_dma_kernel(ids_ref, table_ref, o_ref, buf_ref, sem_ref, *, tm, scale):
    # ids_ref:   SMEM (n_pad,)   int32 token ids (scalar-prefetched)
    # table_ref: HBM  (V, D)     embedding table (memory_space=pl.ANY)
    # o_ref:     VMEM (tm, D)    output tile for this grid step
    # buf_ref:   VMEM (2, tm, D) double-buffered row-gather scratch
    # sem_ref:   DMA semaphores, shape (2,) -- one per scratch slot
    i = pl.program_id(0)
    n = pl.num_programs(0)

    def issue_tile(step, slot):
        base = step * tm

        def body(r, carry):
            tok = ids_ref[base + r]
            pltpu.make_async_copy(
                table_ref.at[pl.ds(tok, 1)],       # (1, D) row in HBM
                buf_ref.at[slot, pl.ds(r, 1)],     # (1, D) row of scratch slot
                sem_ref.at[slot],
            ).start()
            return carry

        # Unrolled so id loads + address math overlap descriptor issue.
        lax.fori_loop(0, tm, body, None, unroll=8)

    # Prime the pipeline with the first tile.
    @pl.when(i == 0)
    def _():
        issue_tile(0, 0)

    # Prefetch the next tile's rows into the other slot (overlaps this step).
    @pl.when(i + 1 < n)
    def _():
        issue_tile(i + 1, (i + 1) % 2)

    slot = i % 2
    # ONE aggregated wait for the whole tile: the DMA semaphore counts bytes
    # and every row copy into this slot is exactly D*itemsize bytes, so a
    # single descriptor covering the full (tm, D) slot waits for all tm copies.
    pltpu.make_async_copy(
        buf_ref.at[slot],
        buf_ref.at[slot],
        sem_ref.at[slot],
    ).wait()

    rows = buf_ref[slot].astype(jnp.float32)
    o_ref[...] = (rows * scale).astype(o_ref.dtype)


def _embed_dma(ids_pad, table, *, tm, scale):
    (n_pad,) = ids_pad.shape
    V, D = table.shape
    kernel = partial(_embedding_dma_kernel, tm=tm, scale=scale)
    return pl.pallas_call(
        kernel,
        out_shape=jax.ShapeDtypeStruct((n_pad, D), table.dtype),
        grid_spec=pltpu.PrefetchScalarGridSpec(
            num_scalar_prefetch=1,                  # ids -> SMEM
            grid=(n_pad // tm,),
            in_specs=[
                pl.BlockSpec(memory_space=pl.ANY),  # table stays in HBM
            ],
            out_specs=pl.BlockSpec((tm, D), lambda i, ids: (i, 0)),
            scratch_shapes=[
                pltpu.VMEM((2, tm, D), table.dtype),   # double-buffered gather scratch
                pltpu.SemaphoreType.DMA((2,)),         # one DMA sem per slot
            ],
        ),
        compiler_params=pltpu.CompilerParams(
            # Cross-step double-buffering carries scratch/semaphore state
            # between grid iterations -> axis must stay sequential.
            dimension_semantics=("arbitrary",),
        ),
    )(ids_pad, table)


# ----------------------------------------------------------------------------
# Wrapper
# ----------------------------------------------------------------------------
def _embed_chunk(ids_chunk, table, *, tm, scale, use_fast):
    (n,) = ids_chunk.shape
    V, D = table.shape
    # Row tile: multiple of 8 (f32 sublane tiling), never larger than the
    # (8-rounded) number of tokens so tiny inputs don't over-pad.
    tm = max(8, min(tm, _round_up(n, 8)))
    n_pad = _round_up(n, tm)
    if n_pad != n:
        # Pad with token 0 (a valid row); padded outputs are sliced off below.
        ids_chunk = jnp.pad(ids_chunk, (0, n_pad - n))
    if use_fast:
        out = _embed_fast(ids_chunk, table, tm=tm, scale=scale)
    else:
        out = _embed_dma(ids_chunk, table, tm=tm, scale=scale)
    return out[:n]


def input_embedding(ids, table, *, tm=256, force_dma_gather=False):
    """Pallas TPU equivalent of InputEmbedding.forward.

    ids:   (B, S) integer token ids.
    table: (vocab_size, d_model) embedding weights.
    Returns (B, S, d_model) = table[ids] * sqrt(d_model).
    """
    B, S = ids.shape
    V, D = table.shape
    scale = math.sqrt(float(D))

    n_tok = B * S
    # Clamp ids so no out-of-range row is ever fetched (OOB DMA guard).
    ids_flat = jnp.clip(ids.reshape(-1).astype(jnp.int32), 0, V - 1)

    table_bytes = V * D * table.dtype.itemsize
    use_fast = (not force_dma_gather
                and table_bytes <= _FAST_PATH_TABLE_BYTES
                and V <= _FAST_PATH_MAX_VOCAB)

    chunks = []
    for start in range(0, n_tok, _MAX_TOKENS_PER_CALL):
        ids_chunk = ids_flat[start:start + _MAX_TOKENS_PER_CALL]
        chunks.append(_embed_chunk(ids_chunk, table, tm=tm, scale=scale,
                                   use_fast=use_fast))
    out = chunks[0] if len(chunks) == 1 else jnp.concatenate(chunks, axis=0)
    return out.reshape(B, S, D)


if __name__ == "__main__":
    key = jax.random.PRNGKey(0)
    k_ids, k_tab = jax.random.split(key)

    B, S = 2, 8
    d_model, vocab_size = 128, 512

    ids = jax.random.randint(k_ids, (B, S), 0, vocab_size, dtype=jnp.int32)
    table = jax.random.normal(k_tab, (vocab_size, d_model), dtype=jnp.float32)

    ref = table[ids] * math.sqrt(d_model)

    # Fast path (small vocab -> resident table, one-hot MXU gather).
    out_fast = jax.block_until_ready(input_embedding(ids, table))
    assert out_fast.shape == (B, S, d_model)
    assert jnp.allclose(out_fast, ref, atol=1e-5, rtol=1e-5), "fast path mismatch"

    # DMA-gather path (forced) exercised on the same inputs.
    out_dma = jax.block_until_ready(input_embedding(ids, table, force_dma_gather=True))
    assert out_dma.shape == (B, S, d_model)
    assert jnp.allclose(out_dma, ref, atol=1e-5, rtol=1e-5), "dma path mismatch"

    print("KERNEL_OK")
</pallas_src>

<mosaic_0001>
module attributes {stable_mosaic.version = 11 : i64} {
  func.func @_embedding_onehot_kernel(%arg0: i32, %arg1: memref<16x1xi32, #tpu.memory_space<vmem>>, %arg2: memref<512x128xf32, #tpu.memory_space<vmem>>, %arg3: memref<16x128xf32, #tpu.memory_space<vmem>>) attributes {dimension_semantics = [#tpu.dimension_semantics<parallel>], iteration_bounds = array<i64: 1>, scalar_prefetch = 0 : i64, scratch_operands = 0 : i64, tpu.core_type = #tpu.core_type<tc>, window_params = [{transform_indices = @transform_0, window_bounds = array<i64: 16, 1>}, {pipeline_mode = #tpu.pipeline_mode<synchronous>, transform_indices = @transform_1, window_bounds = array<i64: 512, 128>}, {transform_indices = @transform_2, window_bounds = array<i64: 16, 128>}]} {
    %c0 = arith.constant 0 : index
    %c0_0 = arith.constant 0 : index
    %0 = vector.load %arg1[%c0, %c0_0] : memref<16x1xi32, #tpu.memory_space<vmem>>, vector<16x1xi32>
    %1 = tpu.iota {dimensions = array<i32: 1>} : vector<16x512xi32>
    %2 = vector.broadcast %0 : vector<16x1xi32> to vector<16x512xi32>
    %3 = arith.cmpi eq, %2, %1 : vector<16x512xi32>
    %4 = arith.extui %3 : vector<16x512xi1> to vector<16x512xi32>
    %5 = arith.sitofp %4 : vector<16x512xi32> to vector<16x512xf32>
    %c0_1 = arith.constant 0 : index
    %c0_2 = arith.constant 0 : index
    %6 = vector.load %arg2[%c0_1, %c0_2] : memref<512x128xf32, #tpu.memory_space<vmem>>, vector<512x128xf32>
    %cst = arith.constant dense<0.000000e+00> : vector<16x128xf32>
    %7 = tpu.matmul %5, %6, %cst {dimension_numbers = #tpu.dot_dimension_numbers<[1], [0], [0], [1], [0, 0, 1, 1], [], []>} : vector<16x512xf32>, vector<512x128xf32>, vector<16x128xf32> -> vector<16x128xf32>
    %cst_3 = arith.constant 11.3137083 : f32
    %8 = vector.broadcast %cst_3 : f32 to vector<16x128xf32>
    %9 = arith.mulf %7, %8 : vector<16x128xf32>
    %c0_4 = arith.constant 0 : index
    %c0_5 = arith.constant 0 : index
    %10 = vector.load %arg3[%c0_4, %c0_5] : memref<16x128xf32, #tpu.memory_space<vmem>>, vector<16x128xf32>
    tpu.vector_store %arg3[%c0_4, %c0_5], %9 {strides = array<i32>} : memref<16x128xf32, #tpu.memory_space<vmem>>, vector<16x128xf32>,
    return
  }
  func.func @transform_0(%arg0: i32) -> (i32, i32) {
    %c0_i32 = arith.constant 0 : i32
    %c0_i32_0 = arith.constant 0 : i32
    return %arg0, %c0_i32 : i32, i32
  }
  func.func @transform_1(%arg0: i32) -> (i32, i32) {
    %c0_i32 = arith.constant 0 : i32
    %c0_i32_0 = arith.constant 0 : i32
    %c0_i32_1 = arith.constant 0 : i32
    return %c0_i32, %c0_i32_0 : i32, i32
  }
  func.func @transform_2(%arg0: i32) -> (i32, i32) {
    %c0_i32 = arith.constant 0 : i32
    %c0_i32_0 = arith.constant 0 : i32
    return %arg0, %c0_i32 : i32, i32
  }
}

</mosaic_0001>

<bundles_post_ra>
// kernel: tpu_custom_call.1
= control target key start
LH: loop header
LB: loop body
LE: loop exit
PB: predicated region body
PF: predicated region fallthrough
CT: control target
= control target key end

     0   :  { %7 = vsyncpa [#allocation3], 0  ;;  %s358_s0 = inlined_call_operand.vmem [shape: s32[16,1], index: 0, kind: input, shape index: {}]   ;;  %s359_s1 = inlined_call_operand.hbm [shape: f32[512,128], index: 1, kind: input, shape index: {}]   ;;  %s360_s2 = inlined_call_operand.hbm [shape: f32[16,128], index: 2, kind: output, shape index: {}]  }
   0x1   :  { %8 = vsyncpa [#allocation4], 0  ;;  %s15_s11 = sshll.u32 %s359_s1, 4  ;;  %s319_s12 = smov [#allocation2]   ;;  %s16_s11 = int_to_ptr.hbm [resolvable:$true] %s15_s11 }
   0x2   :  { %s17_s13 = sshll.u32 %s319_s12, 4  ;;  %s320_s14 = smov 128   ;;  %s18_s13 = int_to_ptr.vmem [resolvable:$true] %s17_s13 }
   0x3   :  { %s321_s15 = smov 8  }
   0x4   :  { %23 = dma.hbm_to_vmem [thread:$0]  %s16_s11, 8192, %s18_s13, [#allocation3], %s320_s14, %s320_s14, %s321_s15  }
   0x5   :  { %315 = dma.done.wait [#allocation3], 8192  }
   0x6   :  { %316 = vsyncadd [#allocation3], 4294959104  ;;  %v322_v0 = vmov 0   ;;  %v28_v1 = vld [vmem:[%s358_s0] sm:$0xff]  ;;  %v80_v2 = vld [vmem:[#allocation2 + $0x78] sm:$0xff]  ;;  %s231_s22 = sshll.u32 %s360_s2, 4  ;;  %s232_s22 = int_to_ptr.hbm [resolvable:$true] %s231_s22 }
   0x7   :  { %266 = vset.pattern.permute.xlu0 %v322_v0  ;;  %129 = vmatpush.msra.mxu0 %v80_v2  ;;  %v96_v3 = vld [vmem:[#allocation2 + $0xf8] sm:$0xff]  ;;  %v79_v6 = vld [vmem:[#allocation2 + $0x70] sm:$0xff]  ;;  %v78_v10 = vld [vmem:[#allocation2 + $0x68] sm:$0xff] }
   0x8   :  { %36 = vperm.xlu0 %266, %v28_v1   ;;  %v112_v4 = vld [vmem:[#allocation2 + $0x178] sm:$0xff]  ;;  %152 = vmatpush.msra.mxu1 %v96_v3  ;;  %v95_v7 = vld [vmem:[#allocation2 + $0xf0] sm:$0xff]  ;;  %v94_v11 = vld [vmem:[#allocation2 + $0xe8] sm:$0xff]  ;;  %v30_v3 = vlaneseq }
   0x9   :  { %v128_v5 = vld [vmem:[#allocation2 + $0x1f8] sm:$0xff]  ;;  %175 = vmatpush.msra.mxu2 %v112_v4  ;;  %v111_v8 = vld [vmem:[#allocation2 + $0x170] sm:$0xff]  ;;  %130 = vmatpush.msra.mxu0 %v79_v6  ;;  %v110_v12 = vld [vmem:[#allocation2 + $0x168] sm:$0xff] }
   0xa   :  { %198 = vmatpush.msra.mxu3 %v128_v5  ;;  %v127_v9 = vld [vmem:[#allocation2 + $0x1f0] sm:$0xff]  ;;  %153 = vmatpush.msra.mxu1 %v95_v7  ;;  %v126_v13 = vld [vmem:[#allocation2 + $0x1e8] sm:$0xff]  ;;  %v77_v14 = vld [vmem:[#allocation2 + $0x60] sm:$0xff]  ;;  %v31_v4 = vand.u32 127, %v30_v3 }
   0xb   :  { %176 = vmatpush.msra.mxu2 %v111_v8  ;;  %131 = vmatpush.msra.mxu0 %v78_v10  ;;  %v93_v15 = vld [vmem:[#allocation2 + $0xe0] sm:$0xff]  ;;  %v29_v17 = vld [vmem:[%s358_s0 + $0x8] sm:$0xff]  ;;  %v76_v19 = vld [vmem:[#allocation2 + $0x58] sm:$0xff]  ;;  %s324_s0 = smov [#allocation5]  }
   0xc   :  { %199 = vmatpush.msra.mxu3 %v127_v9  ;;  %v109_v16 = vld [vmem:[#allocation2 + $0x160] sm:$0xff]  ;;  %154 = vmatpush.msra.mxu1 %v94_v11  ;;  %v92_v20 = vld [vmem:[#allocation2 + $0xd8] sm:$0xff]  ;;  %v75_v23 = vld [vmem:[#allocation2 + $0x50] sm:$0xff]  ;;  %v32_v5 = vadd.s32 128, %v31_v4  ;;  %v33_v6 = vadd.s32 256, %v31_v4  ;;  %v34_v7 = vadd.s32 384, %v31_v4 }
   0xd   :  { %177 = vmatpush.msra.mxu2 %v110_v12  ;;  %v125_v18 = vld [vmem:[#allocation2 + $0x1e0] sm:$0xff]  ;;  %132 = vmatpush.msra.mxu0 %v77_v14  ;;  %v108_v21 = vld [vmem:[#allocation2 + $0x158] sm:$0xff]  ;;  %v91_v24 = vld [vmem:[#allocation2 + $0xd0] sm:$0xff]  ;;  %v323_v9 = vmov 1.0   ;;  %s229_s19 = sshll.u32 %s324_s0, 4  ;;  %s230_s19 = int_to_ptr.vmem [resolvable:$true] %s229_s19 }
   0xe   :  { %200 = vmatpush.msra.mxu3 %v126_v13  ;;  %155 = vmatpush.msra.mxu1 %v93_v15  ;;  %v124_v22 = vld [vmem:[#allocation2 + $0x1d8] sm:$0xff]  ;;  %v107_v25 = vld [vmem:[#allocation2 + $0x150] sm:$0xff]  ;;  %v74_v27 = vld [vmem:[#allocation2 + $0x48] sm:$0xff] }
   0xf   :  { %178 = vmatpush.msra.mxu2 %v109_v16  ;;  %133 = vmatpush.msra.mxu0 %v76_v19  ;;  %v123_v26 = vld [vmem:[#allocation2 + $0x1d0] sm:$0xff]  ;;  %v90_v28 = vld [vmem:[#allocation2 + $0xc8] sm:$0xff]  ;;  %v73_v31 = vld [vmem:[#allocation2 + $0x40] sm:$0xff] }
  0x10   :  { %39 = vperm.xlu0 %266, %v29_v17   ;;  %201 = vmatpush.msra.mxu3 %v125_v18  ;;  %v106_v29 = vld [vmem:[#allocation2 + $0x148] sm:$0xff]  ;;  %v89_v32 = vld [vmem:[#allocation2 + $0xc0] sm:$0xff]  ;;  %v72_v35 = vld [vmem:[#allocation2 + $0x38] sm:$0xff] }
  0x11   :  { %156 = vmatpush.msra.mxu1 %v92_v20  ;;  %179 = vmatpush.msra.mxu2 %v108_v21  ;;  %v122_v30 = vld [vmem:[#allocation2 + $0x1c8] sm:$0xff]  ;;  %v105_v33 = vld [vmem:[#allocation2 + $0x140] sm:$0xff]  ;;  %v88_v36 = vld [vmem:[#allocation2 + $0xb8] sm:$0xff] }
  0x12   :  { %202 = vmatpush.msra.mxu3 %v124_v22  ;;  %134 = vmatpush.msra.mxu0 %v75_v23  ;;  %v121_v34 = vld [vmem:[#allocation2 + $0x1c0] sm:$0xff]  ;;  %v104_v37 = vld [vmem:[#allocation2 + $0x138] sm:$0xff]  ;;  %v71_v39 = vld [vmem:[#allocation2 + $0x30] sm:$0xff] }
  0x13   :  { %157 = vmatpush.msra.mxu1 %v91_v24  ;;  %180 = vmatpush.msra.mxu2 %v107_v25  ;;  %v120_v38 = vld [vmem:[#allocation2 + $0x1b8] sm:$0xff]  ;;  %v87_v40 = vld [vmem:[#allocation2 + $0xb0] sm:$0xff]  ;;  %v70_v43 = vld [vmem:[#allocation2 + $0x28] sm:$0xff] }
  0x14   :  { %203 = vmatpush.msra.mxu3 %v123_v26  ;;  %135 = vmatpush.msra.mxu0 %v74_v27  ;;  %v103_v41 = vld [vmem:[#allocation2 + $0x130] sm:$0xff]  ;;  %v86_v44 = vld [vmem:[#allocation2 + $0xa8] sm:$0xff]  ;;  %v69_v47 = vld [vmem:[#allocation2 + $0x20] sm:$0xff] }
  0x15   :  { %158 = vmatpush.msra.mxu1 %v90_v28  ;;  %181 = vmatpush.msra.mxu2 %v106_v29  ;;  %v119_v42 = vld [vmem:[#allocation2 + $0x1b0] sm:$0xff]  ;;  %v102_v45 = vld [vmem:[#allocation2 + $0x128] sm:$0xff]  ;;  %v85_v48 = vld [vmem:[#allocation2 + $0xa0] sm:$0xff] }
  0x16   :  { %204 = vmatpush.msra.mxu3 %v122_v30  ;;  %136 = vmatpush.msra.mxu0 %v73_v31  ;;  %v118_v46 = vld [vmem:[#allocation2 + $0x1a8] sm:$0xff]  ;;  %v101_v49 = vld [vmem:[#allocation2 + $0x120] sm:$0xff]  ;;  %v68_v51 = vld [vmem:[#allocation2 + $0x18] sm:$0xff] }
  0x17   :  { %159 = vmatpush.msra.mxu1 %v89_v32  ;;  %182 = vmatpush.msra.mxu2 %v105_v33  ;;  %v117_v50 = vld [vmem:[#allocation2 + $0x1a0] sm:$0xff]  ;;  %v84_v52 = vld [vmem:[#allocation2 + $0x98] sm:$0xff]  ;;  %v67_v55 = vld [vmem:[#allocation2 + $0x10] sm:$0xff] }
  0x18   :  { %205 = vmatpush.msra.mxu3 %v121_v34  ;;  %137 = vmatpush.msra.mxu0 %v72_v35  ;;  %v100_v53 = vld [vmem:[#allocation2 + $0x118] sm:$0xff]  ;;  %v83_v56 = vld [vmem:[#allocation2 + $0x90] sm:$0xff]  ;;  %v66_v59 = vld [vmem:[#allocation2 + $0x8] sm:$0xff] }
  0x19   :  { %160 = vmatpush.msra.mxu1 %v88_v36  ;;  %183 = vmatpush.msra.mxu2 %v104_v37  ;;  %v116_v54 = vld [vmem:[#allocation2 + $0x198] sm:$0xff]  ;;  %v99_v57 = vld [vmem:[#allocation2 + $0x110] sm:$0xff]  ;;  %v82_v60 = vld [vmem:[#allocation2 + $0x88] sm:$0xff] }
  0x1a   :  { %206 = vmatpush.msra.mxu3 %v120_v38  ;;  %138 = vmatpush.msra.mxu0 %v71_v39  ;;  %v115_v58 = vld [vmem:[#allocation2 + $0x190] sm:$0xff]  ;;  %v98_v61 = vld [vmem:[#allocation2 + $0x108] sm:$0xff]  ;;  %v65_v63 = vld [vmem:[#allocation2] sm:$0xff] }
  0x1b   :  { %161 = vmatpush.msra.mxu1 %v87_v40  ;;  %184 = vmatpush.msra.mxu2 %v103_v41  ;;  %v114_v62 = vld [vmem:[#allocation2 + $0x188] sm:$0xff]  ;;  %v81_v0 = vld [vmem:[#allocation2 + $0x80] sm:$0xff] }
  0x1c   :  { %207 = vmatpush.msra.mxu3 %v119_v42  ;;  %139 = vmatpush.msra.mxu0 %v70_v43  ;;  %v97_v1 = vld [vmem:[#allocation2 + $0x100] sm:$0xff] }
  0x1d   :  { %162 = vmatpush.msra.mxu1 %v86_v44  ;;  %185 = vmatpush.msra.mxu2 %v102_v45  ;;  %v113_v2 = vld [vmem:[#allocation2 + $0x180] sm:$0xff] }
  0x1e   :  { %208 = vmatpush.msra.mxu3 %v118_v46  ;;  %140 = vmatpush.msra.mxu0 %v69_v47 }
  0x1f   :  { %163 = vmatpush.msra.mxu1 %v85_v48  ;;  %186 = vmatpush.msra.mxu2 %v101_v49 }
  0x20   :  { %209 = vmatpush.msra.mxu3 %v117_v50  ;;  %141 = vmatpush.msra.mxu0 %v68_v51 }
  0x21   :  { %164 = vmatpush.msra.mxu1 %v84_v52  ;;  %187 = vmatpush.msra.mxu2 %v100_v53 }
  0x22   :  { %210 = vmatpush.msra.mxu3 %v116_v54  ;;  %142 = vmatpush.msra.mxu0 %v67_v55 }
  0x23   :  { %165 = vmatpush.msra.mxu1 %v83_v56  ;;  %188 = vmatpush.msra.mxu2 %v99_v57 }
  0x24   :  { %211 = vmatpush.msra.mxu3 %v115_v58  ;;  %143 = vmatpush.msra.mxu0 %v66_v59 }
  0x25   :  { %166 = vmatpush.msra.mxu1 %v82_v60  ;;  %189 = vmatpush.msra.mxu2 %v98_v61 }
  0x26   :  { %212 = vmatpush.msra.mxu3 %v114_v62  ;;  %144 = vmatpush.msra.mxu0 %v65_v63 }
  0x27   :  { %167 = vmatpush.msra.mxu1 %v81_v0  ;;  %190 = vmatpush.msra.mxu2 %v97_v1 }
  0x28   :  { %213 = vmatpush.msra.mxu3 %v113_v2 }
  0x7a   :  { %v37_v8 = vpop.permute.xlu0 %36 }
  0x7b   :  { %vm41_vm0 = vcmp.eq.s32.totalorder %v37_v8, %v31_v4  ;;  %vm42_vm1 = vcmp.eq.s32.totalorder %v37_v8, %v32_v5  ;;  %vm43_vm2 = vcmp.eq.s32.totalorder %v37_v8, %v33_v6  ;;  %vm44_vm3 = vcmp.eq.s32.totalorder %v37_v8, %v34_v7 }
  0x7c   :  { %252 = vmatmul.msk.f32.vlgmr.msra.gmra.mxu0 %vm41_vm0, %v323_v9  ;;  %254 = vmatmul.msk.f32.vlgmr.msra.gmra.mxu1 %vm42_vm1, %v323_v9 }
  0x7d   :  { %256 = vmatmul.msk.f32.vlgmr.msra.gmra.mxu2 %vm43_vm2, %v323_v9  ;;  %258 = vmatmul.msk.f32.vlgmr.msra.gmra.mxu3 %vm44_vm3, %v323_v9 }
  0x82   :  { %v40_v10 = vpop.permute.xlu0 %39 }
  0x83   :  { %vm45_vm4 = vcmp.eq.s32.totalorder %v40_v10, %v31_v4  ;;  %vm46_vm5 = vcmp.eq.s32.totalorder %v40_v10, %v32_v5  ;;  %vm47_vm6 = vcmp.eq.s32.totalorder %v40_v10, %v33_v6  ;;  %vm48_vm7 = vcmp.eq.s32.totalorder %v40_v10, %v34_v7 }
  0x84   :  { %253 = vmatmul.msk.f32.gmra.mxu0 %vm45_vm4, %v323_v9  ;;  %255 = vmatmul.msk.f32.gmra.mxu1 %vm46_vm5, %v323_v9 }
  0x85   :  { %257 = vmatmul.msk.f32.gmra.mxu2 %vm47_vm6, %v323_v9  ;;  %259 = vmatmul.msk.f32.gmra.mxu3 %vm48_vm7, %v323_v9 }
  0xf9   :  { %v146_v11 = vpop.f32.mrf.mxu0  ;;  %v169_v12 = vpop.f32.mrf.mxu1 }
  0xfa   :  { %v170_v13 = vadd.f32 %v169_v12, %v146_v11 }
 0x100   :  { %v192_v14 = vpop.f32.mrf.mxu2  ;;  %v215_v15 = vpop.f32.mrf.mxu3 }
 0x101   :  { %v193_v16 = vadd.f32 %v192_v14, %v170_v13  ;;  %v149_v18 = vpop.f32.mrf.mxu0  ;;  %v172_v19 = vpop.f32.mrf.mxu1 }
 0x102   :  { %v173_v21 = vadd.f32 %v172_v19, %v149_v18 }
 0x103   :  { %v216_v17 = vadd.f32 %v215_v15, %v193_v16 }
 0x105   :  { %v221_v20 = vmul.f32 11.313708, %v216_v17 }
 0x107   :  { %223 = vst [vmem:[#allocation5] sm:$0xff] %v221_v20 }
 0x108   :  { %v195_v22 = vpop.f32.mrf.mxu2  ;;  %v218_v24 = vpop.f32.mrf.mxu3 }
 0x109   :  { %v196_v23 = vadd.f32 %v195_v22, %v173_v21 }
 0x10b   :  { %v219_v25 = vadd.f32 %v218_v24, %v196_v23 }
 0x10d   :  { %v222_v26 = vmul.f32 11.313708, %v219_v25 }
 0x10f   :  { %224 = vst [vmem:[#allocation5 + $0x8] sm:$0xff] %v222_v26 }
 0x110   :  { %237 = dma.vmem_to_hbm [thread:$0]  %s230_s19, 256, %s232_s22, [#allocation4], %s320_s14, %s320_s14, %s321_s15  }
 0x111   :  { %317 = dma.done.wait [#allocation4], 256  }
 0x112   :  { %318 = vsyncadd [#allocation4], 4294967040 }
 0x113   :  { %242 = vsyncpa [#allocation3], 1 }
 0x114   :  { %243 = vsyncpa [#allocation4], 1 }

</bundles_post_ra>
